<compile_context>
chip_gen: v5e
topology: v5e:2x2
jax: 0.10.0
libtpu: 0.0.40
codegen_flags: <defaults>
</compile_context>

<pallas_src>
import functools

import jax
import jax.numpy as jnp
from jax.experimental import pallas as pl
from jax.experimental.pallas import tpu as pltpu


def fused_gru_cell_kernel(x_ref, h_ref, w_zrh_ref, u_zr_ref, uh_ref, b_zrh_ref,
                          out_ref, *, hidden_size):
    H = hidden_size
    x = x_ref[...]
    h = h_ref[...]

    # One wide x-projection for all three gates + a single fused bias add.
    xp = (jnp.dot(x, w_zrh_ref[...], preferred_element_type=jnp.float32)
          + b_zrh_ref[...])
    # One fused h-projection for the z and r gates.
    hp = jnp.dot(h, u_zr_ref[...], preferred_element_type=jnp.float32)

    # z = sigmoid(Wz(x) + Uz(h)),  r = sigmoid(Wr(x) + Ur(h))
    z = jax.nn.sigmoid(xp[:, 0 * H:1 * H] + hp[:, 0 * H:1 * H])
    r = jax.nn.sigmoid(xp[:, 1 * H:2 * H] + hp[:, 1 * H:2 * H])

    # ht = tanh(Wh(x) + Uh(h * r))   (Uh cannot fuse with Uz|Ur: operand is h*r)
    hr = jnp.dot(h * r, uh_ref[...], preferred_element_type=jnp.float32)
    ht = jnp.tanh(xp[:, 2 * H:3 * H] + hr[:, 0:H])

    # h_next = h + z * (ht - h)
    out_ref[...] = h + z * (ht - h)


def pack_params(params, lane_multiple=128):
    """Fuse & pad the GRU parameters once (not per forward call)."""
    H = params["uz"].shape[0]

    def pad_cols(a):
        cols = a.shape[-1]
        target = -(-cols // lane_multiple) * lane_multiple  # round up
        if target == cols:
            return a
        return jnp.pad(a, ((0, 0), (0, target - cols)))

    w_zrh = jnp.concatenate([params["wz"], params["wr"], params["wh"]], axis=1)
    u_zr = jnp.concatenate([params["uz"], params["ur"]], axis=1)
    b_zrh = jnp.concatenate([
        params["bz_w"] + params["bz_u"],
        params["br_w"] + params["br_u"],
        params["bh_w"] + params["bh_u"],
    ]).reshape(1, 3 * H)

    return {
        "w_zrh": pad_cols(w_zrh),      # (input_size, pad(3H))
        "u_zr": pad_cols(u_zr),        # (H, pad(2H))
        "uh": pad_cols(params["uh"]),  # (H, pad(H))
        "b_zrh": pad_cols(b_zrh),      # (1, pad(3H))
        "hidden_size": H,
    }


def my_gru_forward(x, h, packed):
    """Returns (output, h_next) exactly like MyGRU.forward."""
    B = x.shape[0]
    H = packed["hidden_size"]

    vmem = pl.BlockSpec(memory_space=pltpu.MemorySpace.VMEM)

    h_next = pl.pallas_call(
        functools.partial(fused_gru_cell_kernel, hidden_size=H),
        out_shape=jax.ShapeDtypeStruct((B, H), jnp.float32),
        in_specs=[vmem] * 6,
        out_specs=vmem,
    )(x, h, packed["w_zrh"], packed["u_zr"], packed["uh"], packed["b_zrh"])

    output = h_next
    return output, h_next


def init_params(key, input_size, hidden_size):
    """Deterministic synthetic parameters matching nn.Linear shapes
    (stored pre-transposed as (in_features, out_features))."""
    ks = jax.random.split(key, 12)
    scale_x = 1.0 / jnp.sqrt(jnp.float32(input_size))
    scale_h = 1.0 / jnp.sqrt(jnp.float32(hidden_size))

    def u(k, shape, s):
        return jax.random.uniform(k, shape, jnp.float32, -s, s)

    return {
        "wz": u(ks[0], (input_size, hidden_size), scale_x),
        "wr": u(ks[1], (input_size, hidden_size), scale_x),
        "wh": u(ks[2], (input_size, hidden_size), scale_x),
        "uz": u(ks[3], (hidden_size, hidden_size), scale_h),
        "ur": u(ks[4], (hidden_size, hidden_size), scale_h),
        "uh": u(ks[5], (hidden_size, hidden_size), scale_h),
        "bz_w": u(ks[6], (hidden_size,), scale_x),
        "br_w": u(ks[7], (hidden_size,), scale_x),
        "bh_w": u(ks[8], (hidden_size,), scale_x),
        "bz_u": u(ks[9], (hidden_size,), scale_h),
        "br_u": u(ks[10], (hidden_size,), scale_h),
        "bh_u": u(ks[11], (hidden_size,), scale_h),
    }


if __name__ == "__main__":
    input_size = 32
    hidden_size = 32
    batch = 8

    key = jax.random.PRNGKey(0)
    k_x, k_h, k_p = jax.random.split(key, 3)

    x = jax.random.normal(k_x, (batch, input_size), jnp.float32)
    h = jax.random.normal(k_h, (batch, hidden_size), jnp.float32)
    params = init_params(k_p, input_size, hidden_size)
    packed = pack_params(params)

    output, h_next = my_gru_forward(x, h, packed)
    jax.block_until_ready((output, h_next))

    # Pure-JAX reference check of GRU-cell semantics (unfused params).
    bz = params["bz_w"] + params["bz_u"]
    br = params["br_w"] + params["br_u"]
    bh = params["bh_w"] + params["bh_u"]
    z_ref = jax.nn.sigmoid(x @ params["wz"] + h @ params["uz"] + bz)
    r_ref = jax.nn.sigmoid(x @ params["wr"] + h @ params["ur"] + br)
    ht_ref = jnp.tanh(x @ params["wh"] + (h * r_ref) @ params["uh"] + bh)
    h_ref = h + z_ref * (ht_ref - h)
    assert jnp.allclose(h_next, h_ref, atol=1e-5, rtol=1e-5)
    assert jnp.array_equal(output, h_next)

    print("KERNEL_OK")
</pallas_src>

<mosaic_0001>
module attributes {stable_mosaic.version = 11 : i64} {
  func.func @fused_gru_cell_kernel(%arg0: memref<8x32xf32, #tpu.memory_space<vmem>>, %arg1: memref<8x32xf32, #tpu.memory_space<vmem>>, %arg2: memref<32x128xf32, #tpu.memory_space<vmem>>, %arg3: memref<32x128xf32, #tpu.memory_space<vmem>>, %arg4: memref<32x128xf32, #tpu.memory_space<vmem>>, %arg5: memref<1x128xf32, #tpu.memory_space<vmem>>, %arg6: memref<8x32xf32, #tpu.memory_space<vmem>>) attributes {dimension_semantics = [], scalar_prefetch = 0 : i64, scratch_operands = 0 : i64, tpu.core_type = #tpu.core_type<tc>} {
    %c0 = arith.constant 0 : index
    %c0_0 = arith.constant 0 : index
    %0 = vector.load %arg0[%c0, %c0_0] : memref<8x32xf32, #tpu.memory_space<vmem>>, vector<8x32xf32>
    %c0_1 = arith.constant 0 : index
    %c0_2 = arith.constant 0 : index
    %1 = vector.load %arg1[%c0_1, %c0_2] : memref<8x32xf32, #tpu.memory_space<vmem>>, vector<8x32xf32>
    %c0_3 = arith.constant 0 : index
    %c0_4 = arith.constant 0 : index
    %2 = vector.load %arg2[%c0_3, %c0_4] : memref<32x128xf32, #tpu.memory_space<vmem>>, vector<32x128xf32>
    %cst = arith.constant dense<0.000000e+00> : vector<8x128xf32>
    %3 = tpu.matmul %0, %2, %cst {dimension_numbers = #tpu.dot_dimension_numbers<[1], [0], [0], [1], [0, 0, 1, 1], [], []>} : vector<8x32xf32>, vector<32x128xf32>, vector<8x128xf32> -> vector<8x128xf32>
    %c0_5 = arith.constant 0 : index
    %c0_6 = arith.constant 0 : index
    %4 = vector.load %arg5[%c0_5, %c0_6] : memref<1x128xf32, #tpu.memory_space<vmem>>, vector<1x128xf32>
    %5 = vector.broadcast %4 : vector<1x128xf32> to vector<8x128xf32>
    %6 = arith.addf %3, %5 : vector<8x128xf32>
    %c0_7 = arith.constant 0 : index
    %c0_8 = arith.constant 0 : index
    %7 = vector.load %arg3[%c0_7, %c0_8] : memref<32x128xf32, #tpu.memory_space<vmem>>, vector<32x128xf32>
    %cst_9 = arith.constant dense<0.000000e+00> : vector<8x128xf32>
    %8 = tpu.matmul %1, %7, %cst_9 {dimension_numbers = #tpu.dot_dimension_numbers<[1], [0], [0], [1], [0, 0, 1, 1], [], []>} : vector<8x32xf32>, vector<32x128xf32>, vector<8x128xf32> -> vector<8x128xf32>
    %9 = vector.extract_strided_slice %6 {offsets = [0, 0], sizes = [8, 32], strides = [1, 1]} : vector<8x128xf32> to vector<8x32xf32>
    %10 = vector.extract_strided_slice %8 {offsets = [0, 0], sizes = [8, 32], strides = [1, 1]} : vector<8x128xf32> to vector<8x32xf32>
    %11 = arith.addf %9, %10 : vector<8x32xf32>
    %12 = arith.negf %11 : vector<8x32xf32>
    %13 = math.exp %12 : vector<8x32xf32>
    %cst_10 = arith.constant 1.000000e+00 : f32
    %14 = vector.broadcast %cst_10 : f32 to vector<8x32xf32>
    %15 = arith.addf %14, %13 : vector<8x32xf32>
    %16 = arith.divf %14, %15 : vector<8x32xf32>
    %17 = vector.extract_strided_slice %6 {offsets = [0, 32], sizes = [8, 32], strides = [1, 1]} : vector<8x128xf32> to vector<8x32xf32>
    %18 = vector.extract_strided_slice %8 {offsets = [0, 32], sizes = [8, 32], strides = [1, 1]} : vector<8x128xf32> to vector<8x32xf32>
    %19 = arith.addf %17, %18 : vector<8x32xf32>
    %20 = arith.negf %19 : vector<8x32xf32>
    %21 = math.exp %20 : vector<8x32xf32>
    %cst_11 = arith.constant 1.000000e+00 : f32
    %22 = vector.broadcast %cst_11 : f32 to vector<8x32xf32>
    %23 = arith.addf %22, %21 : vector<8x32xf32>
    %24 = arith.divf %22, %23 : vector<8x32xf32>
    %25 = arith.mulf %1, %24 : vector<8x32xf32>
    %c0_12 = arith.constant 0 : index
    %c0_13 = arith.constant 0 : index
    %26 = vector.load %arg4[%c0_12, %c0_13] : memref<32x128xf32, #tpu.memory_space<vmem>>, vector<32x128xf32>
    %cst_14 = arith.constant dense<0.000000e+00> : vector<8x128xf32>
    %27 = tpu.matmul %25, %26, %cst_14 {dimension_numbers = #tpu.dot_dimension_numbers<[1], [0], [0], [1], [0, 0, 1, 1], [], []>} : vector<8x32xf32>, vector<32x128xf32>, vector<8x128xf32> -> vector<8x128xf32>
    %28 = vector.extract_strided_slice %6 {offsets = [0, 64], sizes = [8, 32], strides = [1, 1]} : vector<8x128xf32> to vector<8x32xf32>
    %29 = vector.extract_strided_slice %27 {offsets = [0, 0], sizes = [8, 32], strides = [1, 1]} : vector<8x128xf32> to vector<8x32xf32>
    %30 = arith.addf %28, %29 : vector<8x32xf32>
    %31 = math.tanh %30 : vector<8x32xf32>
    %32 = arith.subf %31, %1 : vector<8x32xf32>
    %33 = arith.mulf %16, %32 : vector<8x32xf32>
    %34 = arith.addf %1, %33 : vector<8x32xf32>
    %c0_15 = arith.constant 0 : index
    %c0_16 = arith.constant 0 : index
    %35 = vector.load %arg6[%c0_15, %c0_16] : memref<8x32xf32, #tpu.memory_space<vmem>>, vector<8x32xf32>
    tpu.vector_store %arg6[%c0_15, %c0_16], %34 {strides = array<i32>} : memref<8x32xf32, #tpu.memory_space<vmem>>, vector<8x32xf32>,
    return
  }
}

</mosaic_0001>

<bundles_post_ra>
// kernel: tpu_custom_call.1
= control target key start
LH: loop header
LB: loop body
LE: loop exit
PB: predicated region body
PF: predicated region fallthrough
CT: control target
= control target key end

     0   :  { %11 = vsyncpa [#allocation3], 0  ;;  %s490_s0 = inlined_call_operand.hbm [shape: f32[8,32], index: 0, kind: input, shape index: {}]   ;;  %s491_s1 = inlined_call_operand.hbm [shape: f32[8,32], index: 1, kind: input, shape index: {}]   ;;  %s492_s2 = inlined_call_operand.hbm [shape: f32[32,128], index: 2, kind: input, shape index: {}]   ;;  %s493_s3 = inlined_call_operand.hbm [shape: f32[32,128], index: 3, kind: input, shape index: {}]   ;;  %s494_s4 = inlined_call_operand.hbm [shape: f32[32,128], index: 4, kind: input, shape index: {}]   ;;  %s495_s5 = inlined_call_operand.vmem [shape: f32[1,128], index: 5, kind: input, shape index: {}]   ;;  %s496_s6 = inlined_call_operand.hbm [shape: f32[8,32], index: 6, kind: output, shape index: {}]  }
   0x1   :  { %12 = vsyncpa [#allocation6], 0 }
   0x2   :  { %13 = vsyncpa [#allocation9], 0  ;;  %s31_s23 = sshll.u32 %s491_s1, 4  ;;  %s32_s23 = int_to_ptr.hbm [resolvable:$true] %s31_s23 }
   0x3   :  { %14 = vsyncpa [#allocation4], 0  ;;  %s420_s24 = smov [#allocation5]   ;;  %s54_s28 = sshll.u32 %s493_s3, 4  ;;  %s55_s28 = int_to_ptr.hbm [resolvable:$true] %s54_s28 }
   0x4   :  { %s33_s25 = sshll.u32 %s420_s24, 4  ;;  %s421_s29 = smov [#allocation8]   ;;  %s34_s25 = int_to_ptr.vmem [resolvable:$true] %s33_s25 }
   0x5   :  { %36 = dma.hbm_to_vmem [thread:$0]  %s32_s23, 128, %s34_s25, [#allocation6]  }
   0x6   :  { %s56_s30 = sshll.u32 %s421_s29, 4  ;;  %s20_s9 = sshll.u32 %s490_s0, 4  ;;  %s57_s30 = int_to_ptr.vmem [resolvable:$true] %s56_s30  ;;  %s21_s9 = int_to_ptr.hbm [resolvable:$true] %s20_s9 }
   0x7   :  { %s422_s1 = smov 128   ;;  %s423_s10 = smov 8  }
   0x8   :  { %62 = dma.hbm_to_vmem [thread:$0]  %s55_s28, 512, %s57_s30, [#allocation9], %s422_s1, %s422_s1, %s423_s10  }
   0x9   :  { %s41_s13 = sshll.u32 %s492_s2, 4  ;;  %s424_s14 = smov [#allocation2]   ;;  %s42_s13 = int_to_ptr.hbm [resolvable:$true] %s41_s13 }
   0xa   :  { %s22_s15 = sshll.u32 %s424_s14, 4  ;;  %s425_s3 = smov [#allocation7]   ;;  %s23_s15 = int_to_ptr.vmem [resolvable:$true] %s22_s15 }
   0xb   :  { %25 = dma.hbm_to_vmem [thread:$0]  %s21_s9, 128, %s23_s15, [#allocation3]  }
   0xc   :  { %s43_s16 = sshll.u32 %s425_s3, 4  ;;  %s67_s0 = sshll.u32 %s494_s4, 4  ;;  %s44_s16 = int_to_ptr.vmem [resolvable:$true] %s43_s16  ;;  %s68_s0 = int_to_ptr.hbm [resolvable:$true] %s67_s0 }
   0xd   :  { %49 = dma.hbm_to_vmem [thread:$0]  %s42_s13, 512, %s44_s16, [#allocation6], %s422_s1, %s422_s1, %s423_s10  }
   0xe   :  { %s426_s19 = smov [#allocation10]  }
   0xf   :  { %s69_s20 = sshll.u32 %s426_s19, 4  ;;  %s70_s20 = int_to_ptr.vmem [resolvable:$true] %s69_s20 }
  0x10   :  { %75 = dma.hbm_to_vmem [thread:$0]  %s68_s0, 512, %s70_s20, [#allocation9], %s422_s1, %s422_s1, %s423_s10  }
  0x11   :  { %412 = dma.done.wait [#allocation3], 128  }
  0x12   :  { %413 = vsyncadd [#allocation3], 4294967168 }
  0x13   :  { %414 = dma.done.wait [#allocation6], 640  }
  0x14   :  { %415 = vsyncadd [#allocation6], 4294966656 }
  0x15   :  { %416 = dma.done.wait [#allocation9], 1024  }
  0x16   :  { %417 = vsyncadd [#allocation9], 4294966272  ;;  %v103_v0 = vld [vmem:[#allocation7 + $0x18] sm:$0xff]  ;;  %v102_v1 = vld [vmem:[#allocation7 + $0x10] sm:$0xff]  ;;  %vm108_vm0 = vcmask 261120   ;;  %s428_s21 = smov 64  }
  0x17   :  { %v135_v2 = vld [vmem:[#allocation8 + $0x18] sm:$0xff]  ;;  %124 = vmatpush.msra.mxu0 %v103_v0  ;;  %v134_v3 = vld [vmem:[#allocation8 + $0x10] sm:$0xff]  ;;  %v101_v4 = vld [vmem:[#allocation7 + $0x8] sm:$0xff]  ;;  %s429_s22 = smov [#allocation11]   ;;  %s235_s26 = sshll.u32 %s496_s6, 4  ;;  %s236_s26 = int_to_ptr.hbm [resolvable:$true] %s235_s26 }
  0x18   :  { %151 = vmatpush.msra.mxu1 %v135_v2  ;;  %v133_v5 = vld [vmem:[#allocation8 + $0x8] sm:$0xff]  ;;  %v100_v6 = vld [vmem:[#allocation7] sm:$0xff]  ;;  %v98_v8 = vld [vmem:[#allocation2] sm:$0xff]  ;;  %s233_s23 = sshll.u32 %s429_s22, 4  ;;  %s234_s23 = int_to_ptr.vmem [resolvable:$true] %s233_s23 }
  0x19   :  { %125 = vmatpush.msra.mxu0 %v102_v1  ;;  %v132_v7 = vld [vmem:[#allocation8] sm:$0xff]  ;;  %v99_v9 = vld [vmem:[#allocation5] sm:$0xff]  ;;  %v261_v10 = vld [vmem:[%s495_s5] ss:$0 sm:$0xff]  ;;  %s427_s5 = smov 96  }
  0x1a   :  { %152 = vmatpush.msra.mxu1 %v134_v3  ;;  %v187_v14 = vld [vmem:[#allocation10 + $0x18] sm:$0xff]  ;;  %v186_v15 = vld [vmem:[#allocation10 + $0x10] sm:$0xff]  ;;  %v185_v17 = vld [vmem:[#allocation10 + $0x8] sm:$0xff]  ;;  %217 = vrot.lane.b32.xlu1 %v99_v9, %s428_s21 }
  0x1b   :  { %126 = vmatpush.msra.mxu0 %v101_v4  ;;  %203 = vmatpush.msra.mxu2 %v187_v14  ;;  %v184_v31 = vld [vmem:[#allocation10] sm:$0xff] }
  0x1c   :  { %153 = vmatpush.msra.mxu1 %v133_v5 }
  0x1d   :  { %127 = vmatpush.msra.mxu0 %v100_v6  ;;  %204 = vmatpush.msra.mxu2 %v186_v15 }
  0x1e   :  { %154 = vmatpush.msra.mxu1 %v132_v7  ;;  %247 = vmatmul.msk.f32.vlgmr.msra.gmra.mxu0 %vm108_vm0, %v98_v8 }
  0x1f   :  { %248 = vmatmul.msk.f32.vlgmr.msra.gmra.mxu1 %vm108_vm0, %v99_v9  ;;  %205 = vmatpush.msra.mxu2 %v185_v17 }
  0x21   :  { %206 = vmatpush.msra.mxu2 %v184_v31 }
  0x8c   :  { %v218_v37 = vpop.permute.xlu1 %217 }
  0x9b   :  { %v129_v11 = vpop.f32.mrf.mxu0 }
  0x9c   :  { %v156_v12 = vpop.f32.mrf.mxu1  ;;  %v130_v13 = vadd.f32 %v261_v10, %v129_v11 }
  0x9e   :  { %v159_v16 = vadd.f32 %v156_v12, %v130_v13 }
  0xa0   :  { %v249_v18 = vmul.f32 -1.442695, %v159_v16 }
  0xa2   :  { %262 = vpow2.f32 %v249_v18 }
  0xa8   :  { %v263_v19 = vpop.eup %262 }
  0xa9   :  { %v163_v20 = vadd.f32 1.0, %v263_v19 }
  0xab   :  { %264 = vrcp.f32 %v163_v20  ;;  %v175_v24 = vand.u32 2147483648, %v163_v20  ;;  %v173_v26 = vand.u32 2147483647, %v163_v20  ;;  %vm169_vm2 = vweird.f32 %v163_v20 }
  0xad   :  { %v176_v28 = vor.u32 1.1754944e-38, %v175_v24  ;;  %vm174_vm4 = vcmp.eq.f32.partialorder %v173_v26, 8.507059e+37 }
  0xb1   :  { %v265_v21 = vpop.eup %264 }
  0xb2   :  { %v165_v22 = vmul.f32 %v265_v21, %v163_v20  ;;  %vm170_vm1 = vweird.f32 %v265_v21 }
  0xb3   :  { %vm171_vm3 = vmor %vm169_vm2, %vm170_vm1 }
  0xb4   :  { %v166_v23 = vsub.f32 1.0, %v165_v22 }
  0xb6   :  { %v167_v25 = vmul.f32 %v265_v21, %v166_v23 }
  0xb8   :  { %v168_v27 = vadd.f32 %v265_v21, %v167_v25 }
  0xba   :  { %v172_v29 = vsel %vm171_vm3, %v265_v21, %v168_v27 }
  0xbb   :  { %v177_v30 = vsel %vm174_vm4, %v176_v28, %v172_v29 }
  0xbc   :  { %180 = vrot.lane.b32.xlu0 %v177_v30, %s427_s5 }
 0x12e   :  { %v181_v32 = vpop.permute.xlu0 %180 }
 0x12f   :  { %v183_v33 = vmul.f32 %v181_v32, %v99_v9 }
 0x131   :  { %250 = vmatmul.msk.f32.vlgmr.msra.gmra.mxu2 %vm108_vm0, %v183_v33 }
 0x1b4   :  { %v208_v34 = vpop.f32.mrf.mxu2 }
 0x1b5   :  { %212 = vrot.lane.b32.xlu0 %v208_v34, %s428_s21 }
 0x227   :  { %v213_v35 = vpop.permute.xlu0 %212 }
 0x228   :  { %v215_v36 = vadd.f32 %v213_v35, %v130_v13 }
 0x22a   :  { %266 = vtanh.f32 %v215_v36 }
 0x230   :  { %v267_v38 = vpop.eup %266 }
 0x231   :  { %v220_v39 = vsub.f32 %v267_v38, %v218_v37 }
 0x233   :  { %222 = vrot.lane.b32.xlu1 %v220_v39, %s428_s21 }
 0x2a5   :  { %v223_v40 = vpop.permute.xlu1 %222 }
 0x2a6   :  { %v225_v41 = vmul.f32 %v223_v40, %v177_v30 }
 0x2a8   :  { %v226_v42 = vadd.f32 %v225_v41, %v99_v9 }
 0x2aa   :  { %227 = vst.msk [vmem:[#allocation11] sm:$0xff] %vm108_vm0, %v226_v42 }
 0x2ab   :  { %238 = dma.vmem_to_hbm [thread:$0]  %s234_s23, 128, %s236_s26, [#allocation4]  }
 0x2ac   :  { %418 = dma.done.wait [#allocation4], 128  }
 0x2ad   :  { %419 = vsyncadd [#allocation4], 4294967168 }
 0x2ae   :  { %243 = vsyncpa [#allocation3], 1 }
 0x2af   :  { %244 = vsyncpa [#allocation6], 1 }
 0x2b0   :  { %245 = vsyncpa [#allocation9], 1 }
 0x2b1   :  { %246 = vsyncpa [#allocation4], 1 }

</bundles_post_ra>
